<compile_context>
chip_gen: v7x
topology: tpu7x:2x2x1
jax: 0.10.0
libtpu: 0.0.40
codegen_flags: <defaults>
</compile_context>

<pallas_src>
import jax
import jax.numpy as jnp
from jax.experimental import pallas as pl
from jax.experimental.pallas import tpu as pltpu

# f32 slab layout constant: bias row block is padded to a full (8, 128) tile.
_BIAS_ROWS = 8


def _bilstm_kernel(sent_ref, emb_ref, wslab_ref, fslab_ref, y_ref, x_scratch):
    """sent_ref: SMEM (L,) int32; emb_ref: VMEM (vocab, E) f32;
    wslab_ref: VMEM (E+H, 8H) bf16 [rows 0:E = wx_all, rows E:E+H = wh_f pad];
    fslab_ref: VMEM (_BIAS_ROWS+2H+8, 8H) f32 [row 0 = b_all, rows B:B+2H =
    w_lin in lanes 0:H, row B+2H = b_lin]; y_ref: (1, H) f32."""
    L = sent_ref.shape[0]
    E = emb_ref.shape[1]
    H = y_ref.shape[1]
    H4, H8 = 4 * H, 8 * H
    B = _BIAS_ROWS

    # ---- In-kernel embedding gather: L dynamic row reads into VMEM scratch.
    for t in range(L):
        idx = sent_ref[t]                                   # int32 scalar (SMEM)
        x_scratch[t:t + 1, :] = emb_ref[pl.ds(idx, 1), :]   # (1, E) row gather

    # ---- Fused fwd+bwd input projection, both biases folded in:
    # (L, E)bf16 @ (E, 8H)bf16 -> (L, 8H) f32, computed once (off critical path).
    b_all = fslab_ref[0:1, :]                               # (1, 8H) f32
    preact = jnp.dot(x_scratch[...].astype(jnp.bfloat16),
                     wslab_ref[0:E, :],
                     preferred_element_type=jnp.float32) + b_all

    # ---- Backward direction: reverse half of lstm_out[-1] is the backward
    # LSTM's FIRST step (input x[L-1], zero h/c) => h @ Wh_b == 0, f*c0 == 0.
    zb = preact[L - 1:L, H4:H8]                             # (1, 4H)
    sb = jax.nn.sigmoid(zb)                                 # whole-vreg (EUP)
    tb = jnp.tanh(zb)
    cb = sb[:, 0:H] * tb[:, 2 * H:3 * H]                    # i * g
    h_bwd = sb[:, 3 * H:4 * H] * jnp.tanh(cb)               # o * tanh(c)
    # Backward half of the output linear + bias, computed early so it hides
    # under the forward recurrence. Static ref slices are free.
    y_b = (jnp.dot(h_bwd, fslab_ref[B + H:B + 2 * H, 0:H],
                   preferred_element_type=jnp.float32)
           + fslab_ref[B + 2 * H:B + 2 * H + 1, 0:H])       # (1, H)

    # ---- Forward recurrence, fully unrolled (L static at trace time).
    wh_f = wslab_ref[E:E + H, 0:H4]                         # (H, 4H) bf16, hoisted
    h = jnp.zeros((1, H), jnp.float32)
    c = jnp.zeros((1, H), jnp.float32)
    for t in range(L):
        z = preact[t:t + 1, 0:H4] + jnp.dot(
            h.astype(jnp.bfloat16), wh_f,
            preferred_element_type=jnp.float32)             # (1, 4H)
        s = jax.nn.sigmoid(z)                               # i|f|·|o lanes
        tg = jnp.tanh(z)                                    # g lanes used
        c = s[:, H:2 * H] * c + s[:, 0:H] * tg[:, 2 * H:3 * H]
        h = s[:, 3 * H:4 * H] * jnp.tanh(c)

    # ---- Forward half of the output linear (no concat): y = h @ Wl_f + y_b.
    y = jnp.dot(h, fslab_ref[B:B + H, 0:H],
                preferred_element_type=jnp.float32) + y_b
    y_ref[...] = y.astype(y_ref.dtype)


def bilstm_encoder_quora(sentence, packed):
    """y = Linear(BiLSTM(Embedding(sentence))[-1]); y: (1, H). Takes
    pre-packed params (pack_params); no per-call host-side repacking."""
    L = sentence.shape[0]
    E = packed["embedding"].shape[1]
    H = packed["slab_f32"].shape[1] // 8

    smem = pl.BlockSpec(memory_space=pltpu.MemorySpace.SMEM)
    vmem = pl.BlockSpec(memory_space=pltpu.MemorySpace.VMEM)
    return pl.pallas_call(
        _bilstm_kernel,
        out_shape=jax.ShapeDtypeStruct((1, H), jnp.float32),
        in_specs=[smem, vmem, vmem, vmem],
        out_specs=vmem,
        scratch_shapes=[pltpu.VMEM((L, E), jnp.float32)],
    )(jnp.asarray(sentence, jnp.int32), packed["embedding"],
      packed["slab_bf16"], packed["slab_f32"])


def pack_params(params):
    """ONE-TIME packing at parameter-load time (not per call).

    bf16 MXU slab (E+H, 8H):
      rows [0, E)   : [wx_f | wx_b] = weight_ih^T for both directions
      rows [E, E+H) : wh_f (forward weight_hh^T), lane-padded to 8H
    f32 slab (_BIAS_ROWS + 2H + 8, 8H):
      row 0                 : [b_f | b_b]  (each = b_ih + b_hh)
      rows [B, B+2H), 0:H   : w_lin^T (2H, H)
      row  B+2H,       0:H  : b_lin
    """
    E = params["wx_f"].shape[0]
    H = params["b_lin"].shape[-1]
    B = _BIAS_ROWS

    wx_all = jnp.concatenate([params["wx_f"], params["wx_b"]], axis=-1)   # (E, 8H)
    wh_pad = jnp.pad(params["wh_f"], ((0, 0), (0, 4 * H)))                # (H, 8H)
    slab_bf16 = jnp.concatenate([wx_all, wh_pad], axis=0).astype(jnp.bfloat16)

    b_all = jnp.concatenate([params["b_f"], params["b_b"]], axis=-1)      # (1, 8H)
    rows = B + 2 * H + 8
    slab_f32 = jnp.zeros((rows, 8 * H), jnp.float32)
    slab_f32 = slab_f32.at[0:1, :].set(b_all)
    slab_f32 = slab_f32.at[B:B + 2 * H, 0:H].set(params["w_lin"])
    slab_f32 = slab_f32.at[B + 2 * H:B + 2 * H + 1, 0:H].set(params["b_lin"])

    return dict(embedding=params["embedding"].astype(jnp.float32),
                slab_bf16=jax.device_put(slab_bf16),
                slab_f32=jax.device_put(slab_f32))


def init_params(key, vocab_size, embedding_dim, hidden_dim):
    """Deterministic synthetic init mirroring the torch module's shapes."""
    E, H = embedding_dim, hidden_dim
    ks = jax.random.split(key, 6)

    def u(k, shape, scale):
        return jax.random.uniform(k, shape, jnp.float32, -scale, scale)

    # nn.Embedding(vocab, E): N(0, 1)
    embedding = jax.random.normal(ks[0], (vocab_size, E), jnp.float32)

    # nn.LSTM(E, H, bidirectional=True), stored gate-stacked & transposed:
    # weight_ih^T -> (E, 4H), weight_hh^T -> (H, 4H), b_ih + b_hh -> (1, 4H),
    # PyTorch gate order (i, f, g, o) along the 4H axis.
    s = 1.0 / float(H) ** 0.5

    def lstm_dir(k):
        k1, k2, k3, k4 = jax.random.split(k, 4)
        wx = u(k1, (E, 4 * H), s)
        wh = u(k2, (H, 4 * H), s)
        b = u(k3, (1, 4 * H), s) + u(k4, (1, 4 * H), s)
        return wx, wh, b

    wx_f, wh_f, b_f = lstm_dir(ks[1])
    wx_b, wh_b, b_b = lstm_dir(ks[2])   # wh_b kept for fidelity (unused: 1-step bwd)

    # nn.Linear(2H, H): weight^T -> (2H, H), bias -> (1, H)
    sl = 1.0 / float(2 * H) ** 0.5
    w_lin = u(ks[3], (2 * H, H), sl)
    b_lin = u(ks[4], (1, H), sl)
    return dict(embedding=embedding,
                wx_f=wx_f, wh_f=wh_f, b_f=b_f,
                wx_b=wx_b, wh_b=wh_b, b_b=b_b,
                w_lin=w_lin, b_lin=b_lin)


def _reference(sentence, params):
    """Pure-JAX f32 reference of the same forward pass (correctness check)."""
    embeds = jnp.take(params["embedding"], sentence, axis=0).astype(jnp.float32)
    L = embeds.shape[0]
    H = params["b_lin"].shape[-1]

    def cell(x, h, c, wx, wh, b):
        z = x @ wx + h @ wh + b                     # (1, 4H)
        i = jax.nn.sigmoid(z[:, 0:H])
        f = jax.nn.sigmoid(z[:, H:2 * H])
        g = jnp.tanh(z[:, 2 * H:3 * H])
        o = jax.nn.sigmoid(z[:, 3 * H:4 * H])
        c2 = f * c + i * g
        return o * jnp.tanh(c2), c2

    h = c = jnp.zeros((1, H), jnp.float32)
    for t in range(L):
        h, c = cell(embeds[t:t + 1], h, c,
                    params["wx_f"], params["wh_f"], params["b_f"])
    hb, _ = cell(embeds[L - 1:L], jnp.zeros((1, H)), jnp.zeros((1, H)),
                 params["wx_b"], params["wh_b"], params["b_b"])
    return (jnp.concatenate([h, hb], axis=-1) @ params["w_lin"]
            + params["b_lin"])


if __name__ == "__main__":
    vocab_size, embedding_dim, hidden_dim, seq_len = 50, 32, 32, 8
    key = jax.random.PRNGKey(0)
    pkey, skey = jax.random.split(key)

    raw_params = init_params(pkey, vocab_size, embedding_dim, hidden_dim)
    packed = pack_params(raw_params)        # one-time, at parameter-load time
    sentence = jax.random.randint(skey, (seq_len,), 0, vocab_size,
                                  dtype=jnp.int32)

    y = jax.block_until_ready(bilstm_encoder_quora(sentence, packed))

    y_ref = _reference(sentence, raw_params)
    assert y.shape == (1, hidden_dim), y.shape
    assert y.dtype == jnp.float32
    # Tolerance loosened vs. the pure-f32 path: MXU operands are fed in bf16
    # (f32 accumulate), so ~1e-3..1e-2 deviation from the f32 reference.
    assert jnp.allclose(y, y_ref, atol=2e-2, rtol=2e-2), (y, y_ref)
    print("KERNEL_OK")
</pallas_src>

<mosaic_0001>
module attributes {stable_mosaic.version = 11 : i64} {
  func.func @_bilstm_kernel(%arg0: memref<8xi32, #tpu.memory_space<smem>>, %arg1: memref<50x32xf32, #tpu.memory_space<vmem>>, %arg2: memref<64x256xbf16, #tpu.memory_space<vmem>>, %arg3: memref<80x256xf32, #tpu.memory_space<vmem>>, %arg4: memref<1x32xf32, #tpu.memory_space<vmem>>, %arg5: memref<8x32xf32, #tpu.memory_space<vmem>>) attributes {dimension_semantics = [], scalar_prefetch = 0 : i64, scratch_operands = 1 : i64, tpu.core_type = #tpu.core_type<tc>} {
    %c0 = arith.constant 0 : index
    %0 = memref.load %arg0[%c0] : memref<8xi32, #tpu.memory_space<smem>>
    %1 = arith.index_cast %0 : i32 to index
    %c0_0 = arith.constant 0 : index
    %2 = vector.load %arg1[%1, %c0_0] : memref<50x32xf32, #tpu.memory_space<vmem>>, vector<1x32xf32>
    %c0_1 = arith.constant 0 : index
    %c0_2 = arith.constant 0 : index
    %3 = vector.load %arg5[%c0_1, %c0_2] : memref<8x32xf32, #tpu.memory_space<vmem>>, vector<1x32xf32>
    tpu.vector_store %arg5[%c0_1, %c0_2], %2 {strides = array<i32>} : memref<8x32xf32, #tpu.memory_space<vmem>>, vector<1x32xf32>,
    %c1 = arith.constant 1 : index
    %4 = memref.load %arg0[%c1] : memref<8xi32, #tpu.memory_space<smem>>
    %5 = arith.index_cast %4 : i32 to index
    %c0_3 = arith.constant 0 : index
    %6 = vector.load %arg1[%5, %c0_3] : memref<50x32xf32, #tpu.memory_space<vmem>>, vector<1x32xf32>
    %c1_4 = arith.constant 1 : index
    %c0_5 = arith.constant 0 : index
    %7 = vector.load %arg5[%c1_4, %c0_5] : memref<8x32xf32, #tpu.memory_space<vmem>>, vector<1x32xf32>
    tpu.vector_store %arg5[%c1_4, %c0_5], %6 {strides = array<i32>} : memref<8x32xf32, #tpu.memory_space<vmem>>, vector<1x32xf32>,
    %c2 = arith.constant 2 : index
    %8 = memref.load %arg0[%c2] : memref<8xi32, #tpu.memory_space<smem>>
    %9 = arith.index_cast %8 : i32 to index
    %c0_6 = arith.constant 0 : index
    %10 = vector.load %arg1[%9, %c0_6] : memref<50x32xf32, #tpu.memory_space<vmem>>, vector<1x32xf32>
    %c2_7 = arith.constant 2 : index
    %c0_8 = arith.constant 0 : index
    %11 = vector.load %arg5[%c2_7, %c0_8] : memref<8x32xf32, #tpu.memory_space<vmem>>, vector<1x32xf32>
    tpu.vector_store %arg5[%c2_7, %c0_8], %10 {strides = array<i32>} : memref<8x32xf32, #tpu.memory_space<vmem>>, vector<1x32xf32>,
    %c3 = arith.constant 3 : index
    %12 = memref.load %arg0[%c3] : memref<8xi32, #tpu.memory_space<smem>>
    %13 = arith.index_cast %12 : i32 to index
    %c0_9 = arith.constant 0 : index
    %14 = vector.load %arg1[%13, %c0_9] : memref<50x32xf32, #tpu.memory_space<vmem>>, vector<1x32xf32>
    %c3_10 = arith.constant 3 : index
    %c0_11 = arith.constant 0 : index
    %15 = vector.load %arg5[%c3_10, %c0_11] : memref<8x32xf32, #tpu.memory_space<vmem>>, vector<1x32xf32>
    tpu.vector_store %arg5[%c3_10, %c0_11], %14 {strides = array<i32>} : memref<8x32xf32, #tpu.memory_space<vmem>>, vector<1x32xf32>,
    %c4 = arith.constant 4 : index
    %16 = memref.load %arg0[%c4] : memref<8xi32, #tpu.memory_space<smem>>
    %17 = arith.index_cast %16 : i32 to index
    %c0_12 = arith.constant 0 : index
    %18 = vector.load %arg1[%17, %c0_12] : memref<50x32xf32, #tpu.memory_space<vmem>>, vector<1x32xf32>
    %c4_13 = arith.constant 4 : index
    %c0_14 = arith.constant 0 : index
    %19 = vector.load %arg5[%c4_13, %c0_14] : memref<8x32xf32, #tpu.memory_space<vmem>>, vector<1x32xf32>
    tpu.vector_store %arg5[%c4_13, %c0_14], %18 {strides = array<i32>} : memref<8x32xf32, #tpu.memory_space<vmem>>, vector<1x32xf32>,
    %c5 = arith.constant 5 : index
    %20 = memref.load %arg0[%c5] : memref<8xi32, #tpu.memory_space<smem>>
    %21 = arith.index_cast %20 : i32 to index
    %c0_15 = arith.constant 0 : index
    %22 = vector.load %arg1[%21, %c0_15] : memref<50x32xf32, #tpu.memory_space<vmem>>, vector<1x32xf32>
    %c5_16 = arith.constant 5 : index
    %c0_17 = arith.constant 0 : index
    %23 = vector.load %arg5[%c5_16, %c0_17] : memref<8x32xf32, #tpu.memory_space<vmem>>, vector<1x32xf32>
    tpu.vector_store %arg5[%c5_16, %c0_17], %22 {strides = array<i32>} : memref<8x32xf32, #tpu.memory_space<vmem>>, vector<1x32xf32>,
    %c6 = arith.constant 6 : index
    %24 = memref.load %arg0[%c6] : memref<8xi32, #tpu.memory_space<smem>>
    %25 = arith.index_cast %24 : i32 to index
    %c0_18 = arith.constant 0 : index
    %26 = vector.load %arg1[%25, %c0_18] : memref<50x32xf32, #tpu.memory_space<vmem>>, vector<1x32xf32>
    %c6_19 = arith.constant 6 : index
    %c0_20 = arith.constant 0 : index
    %27 = vector.load %arg5[%c6_19, %c0_20] : memref<8x32xf32, #tpu.memory_space<vmem>>, vector<1x32xf32>
    tpu.vector_store %arg5[%c6_19, %c0_20], %26 {strides = array<i32>} : memref<8x32xf32, #tpu.memory_space<vmem>>, vector<1x32xf32>,
    %c7 = arith.constant 7 : index
    %28 = memref.load %arg0[%c7] : memref<8xi32, #tpu.memory_space<smem>>
    %29 = arith.index_cast %28 : i32 to index
    %c0_21 = arith.constant 0 : index
    %30 = vector.load %arg1[%29, %c0_21] : memref<50x32xf32, #tpu.memory_space<vmem>>, vector<1x32xf32>
    %c7_22 = arith.constant 7 : index
    %c0_23 = arith.constant 0 : index
    %31 = vector.load %arg5[%c7_22, %c0_23] : memref<8x32xf32, #tpu.memory_space<vmem>>, vector<1x32xf32>
    tpu.vector_store %arg5[%c7_22, %c0_23], %30 {strides = array<i32>} : memref<8x32xf32, #tpu.memory_space<vmem>>, vector<1x32xf32>,
    %c0_24 = arith.constant 0 : index
    %c0_25 = arith.constant 0 : index
    %32 = vector.load %arg3[%c0_24, %c0_25] : memref<80x256xf32, #tpu.memory_space<vmem>>, vector<1x256xf32>
    %c0_26 = arith.constant 0 : index
    %c0_27 = arith.constant 0 : index
    %33 = vector.load %arg5[%c0_26, %c0_27] : memref<8x32xf32, #tpu.memory_space<vmem>>, vector<8x32xf32>
    %34 = arith.truncf %33 : vector<8x32xf32> to vector<8x32xbf16>
    %c0_28 = arith.constant 0 : index
    %c0_29 = arith.constant 0 : index
    %35 = vector.load %arg2[%c0_28, %c0_29] : memref<64x256xbf16, #tpu.memory_space<vmem>>, vector<32x256xbf16>
    %cst = arith.constant dense<0.000000e+00> : vector<8x256xf32>
    %36 = tpu.matmul %34, %35, %cst {dimension_numbers = #tpu.dot_dimension_numbers<[1], [0], [0], [1], [0, 0, 1, 1], [], []>} : vector<8x32xbf16>, vector<32x256xbf16>, vector<8x256xf32> -> vector<8x256xf32>
    %37 = vector.broadcast %32 : vector<1x256xf32> to vector<8x256xf32>
    %38 = arith.addf %36, %37 : vector<8x256xf32>
    %39 = vector.extract_strided_slice %38 {offsets = [7, 128], sizes = [1, 128], strides = [1, 1]} : vector<8x256xf32> to vector<1x128xf32>
    %40 = arith.negf %39 : vector<1x128xf32>
    %41 = math.exp %40 : vector<1x128xf32>
    %cst_30 = arith.constant 1.000000e+00 : f32
    %42 = vector.broadcast %cst_30 : f32 to vector<1x128xf32>
    %43 = arith.addf %42, %41 : vector<1x128xf32>
    %44 = arith.divf %42, %43 : vector<1x128xf32>
    %45 = math.tanh %39 : vector<1x128xf32>
    %46 = vector.extract_strided_slice %44 {offsets = [0, 0], sizes = [1, 32], strides = [1, 1]} : vector<1x128xf32> to vector<1x32xf32>
    %47 = vector.extract_strided_slice %45 {offsets = [0, 64], sizes = [1, 32], strides = [1, 1]} : vector<1x128xf32> to vector<1x32xf32>
    %48 = arith.mulf %46, %47 : vector<1x32xf32>
    %49 = vector.extract_strided_slice %44 {offsets = [0, 96], sizes = [1, 32], strides = [1, 1]} : vector<1x128xf32> to vector<1x32xf32>
    %50 = math.tanh %48 : vector<1x32xf32>
    %51 = arith.mulf %49, %50 : vector<1x32xf32>
    %c40 = arith.constant 40 : index
    %c0_31 = arith.constant 0 : index
    %52 = vector.load %arg3[%c40, %c0_31] : memref<80x256xf32, #tpu.memory_space<vmem>>, vector<32x32xf32>
    %cst_32 = arith.constant dense<0.000000e+00> : vector<1x32xf32>
    %53 = tpu.matmul %51, %52, %cst_32 {dimension_numbers = #tpu.dot_dimension_numbers<[1], [0], [0], [1], [0, 0, 1, 1], [], []>} : vector<1x32xf32>, vector<32x32xf32>, vector<1x32xf32> -> vector<1x32xf32>
    %c72 = arith.constant 72 : index
    %c0_33 = arith.constant 0 : index
    %54 = vector.load %arg3[%c72, %c0_33] : memref<80x256xf32, #tpu.memory_space<vmem>>, vector<1x32xf32>
    %55 = arith.addf %53, %54 : vector<1x32xf32>
    %c32 = arith.constant 32 : index
    %c0_34 = arith.constant 0 : index
    %56 = vector.load %arg2[%c32, %c0_34] : memref<64x256xbf16, #tpu.memory_space<vmem>>, vector<32x128xbf16>
    %cst_35 = arith.constant 0.000000e+00 : f32
    %57 = vector.broadcast %cst_35 : f32 to vector<1x32xf32>
    %cst_36 = arith.constant 0.000000e+00 : f32
    %58 = vector.broadcast %cst_36 : f32 to vector<1x32xf32>
    %59 = vector.extract_strided_slice %38 {offsets = [0, 0], sizes = [1, 128], strides = [1, 1]} : vector<8x256xf32> to vector<1x128xf32>
    %60 = arith.truncf %57 : vector<1x32xf32> to vector<1x32xbf16>
    %cst_37 = arith.constant dense<0.000000e+00> : vector<1x128xf32>
    %61 = tpu.matmul %60, %56, %cst_37 {dimension_numbers = #tpu.dot_dimension_numbers<[1], [0], [0], [1], [0, 0, 1, 1], [], []>} : vector<1x32xbf16>, vector<32x128xbf16>, vector<1x128xf32> -> vector<1x128xf32>
    %62 = arith.addf %59, %61 : vector<1x128xf32>
    %63 = arith.negf %62 : vector<1x128xf32>
    %64 = math.exp %63 : vector<1x128xf32>
    %cst_38 = arith.constant 1.000000e+00 : f32
    %65 = vector.broadcast %cst_38 : f32 to vector<1x128xf32>
    %66 = arith.addf %65, %64 : vector<1x128xf32>
    %67 = arith.divf %65, %66 : vector<1x128xf32>
    %68 = math.tanh %62 : vector<1x128xf32>
    %69 = vector.extract_strided_slice %67 {offsets = [0, 32], sizes = [1, 32], strides = [1, 1]} : vector<1x128xf32> to vector<1x32xf32>
    %70 = arith.mulf %69, %58 : vector<1x32xf32>
    %71 = vector.extract_strided_slice %67 {offsets = [0, 0], sizes = [1, 32], strides = [1, 1]} : vector<1x128xf32> to vector<1x32xf32>
    %72 = vector.extract_strided_slice %68 {offsets = [0, 64], sizes = [1, 32], strides = [1, 1]} : vector<1x128xf32> to vector<1x32xf32>
    %73 = arith.mulf %71, %72 : vector<1x32xf32>
    %74 = arith.addf %70, %73 : vector<1x32xf32>
    %75 = vector.extract_strided_slice %67 {offsets = [0, 96], sizes = [1, 32], strides = [1, 1]} : vector<1x128xf32> to vector<1x32xf32>
    %76 = math.tanh %74 : vector<1x32xf32>
    %77 = arith.mulf %75, %76 : vector<1x32xf32>
    %78 = vector.extract_strided_slice %38 {offsets = [1, 0], sizes = [1, 128], strides = [1, 1]} : vector<8x256xf32> to vector<1x128xf32>
    %79 = arith.truncf %77 : vector<1x32xf32> to vector<1x32xbf16>
    %cst_39 = arith.constant dense<0.000000e+00> : vector<1x128xf32>
    %80 = tpu.matmul %79, %56, %cst_39 {dimension_numbers = #tpu.dot_dimension_numbers<[1], [0], [0], [1], [0, 0, 1, 1], [], []>} : vector<1x32xbf16>, vector<32x128xbf16>, vector<1x128xf32> -> vector<1x128xf32>
    %81 = arith.addf %78, %80 : vector<1x128xf32>
    %82 = arith.negf %81 : vector<1x128xf32>
    %83 = math.exp %82 : vector<1x128xf32>
    %cst_40 = arith.constant 1.000000e+00 : f32
    %84 = vector.broadcast %cst_40 : f32 to vector<1x128xf32>
    %85 = arith.addf %84, %83 : vector<1x128xf32>
    %86 = arith.divf %84, %85 : vector<1x128xf32>
    %87 = math.tanh %81 : vector<1x128xf32>
    %88 = vector.extract_strided_slice %86 {offsets = [0, 32], sizes = [1, 32], strides = [1, 1]} : vector<1x128xf32> to vector<1x32xf32>
    %89 = arith.mulf %88, %74 : vector<1x32xf32>
    %90 = vector.extract_strided_slice %86 {offsets = [0, 0], sizes = [1, 32], strides = [1, 1]} : vector<1x128xf32> to vector<1x32xf32>
    %91 = vector.extract_strided_slice %87 {offsets = [0, 64], sizes = [1, 32], strides = [1, 1]} : vector<1x128xf32> to vector<1x32xf32>
    %92 = arith.mulf %90, %91 : vector<1x32xf32>
    %93 = arith.addf %89, %92 : vector<1x32xf32>
    %94 = vector.extract_strided_slice %86 {offsets = [0, 96], sizes = [1, 32], strides = [1, 1]} : vector<1x128xf32> to vector<1x32xf32>
    %95 = math.tanh %93 : vector<1x32xf32>
    %96 = arith.mulf %94, %95 : vector<1x32xf32>
    %97 = vector.extract_strided_slice %38 {offsets = [2, 0], sizes = [1, 128], strides = [1, 1]} : vector<8x256xf32> to vector<1x128xf32>
    %98 = arith.truncf %96 : vector<1x32xf32> to vector<1x32xbf16>
    %cst_41 = arith.constant dense<0.000000e+00> : vector<1x128xf32>
    %99 = tpu.matmul %98, %56, %cst_41 {dimension_numbers = #tpu.dot_dimension_numbers<[1], [0], [0], [1], [0, 0, 1, 1], [], []>} : vector<1x32xbf16>, vector<32x128xbf16>, vector<1x128xf32> -> vector<1x128xf32>
    %100 = arith.addf %97, %99 : vector<1x128xf32>
    %101 = arith.negf %100 : vector<1x128xf32>
    %102 = math.exp %101 : vector<1x128xf32>
    %cst_42 = arith.constant 1.000000e+00 : f32
    %103 = vector.broadcast %cst_42 : f32 to vector<1x128xf32>
    %104 = arith.addf %103, %102 : vector<1x128xf32>
    %105 = arith.divf %103, %104 : vector<1x128xf32>
    %106 = math.tanh %100 : vector<1x128xf32>
    %107 = vector.extract_strided_slice %105 {offsets = [0, 32], sizes = [1, 32], strides = [1, 1]} : vector<1x128xf32> to vector<1x32xf32>
    %108 = arith.mulf %107, %93 : vector<1x32xf32>
    %109 = vector.extract_strided_slice %105 {offsets = [0, 0], sizes = [1, 32], strides = [1, 1]} : vector<1x128xf32> to vector<1x32xf32>
    %110 = vector.extract_strided_slice %106 {offsets = [0, 64], sizes = [1, 32], strides = [1, 1]} : vector<1x128xf32> to vector<1x32xf32>
    %111 = arith.mulf %109, %110 : vector<1x32xf32>
    %112 = arith.addf %108, %111 : vector<1x32xf32>
    %113 = vector.extract_strided_slice %105 {offsets = [0, 96], sizes = [1, 32], strides = [1, 1]} : vector<1x128xf32> to vector<1x32xf32>
    %114 = math.tanh %112 : vector<1x32xf32>
    %115 = arith.mulf %113, %114 : vector<1x32xf32>
    %116 = vector.extract_strided_slice %38 {offsets = [3, 0], sizes = [1, 128], strides = [1, 1]} : vector<8x256xf32> to vector<1x128xf32>
    %117 = arith.truncf %115 : vector<1x32xf32> to vector<1x32xbf16>
    %cst_43 = arith.constant dense<0.000000e+00> : vector<1x128xf32>
    %118 = tpu.matmul %117, %56, %cst_43 {dimension_numbers = #tpu.dot_dimension_numbers<[1], [0], [0], [1], [0, 0, 1, 1], [], []>} : vector<1x32xbf16>, vector<32x128xbf16>, vector<1x128xf32> -> vector<1x128xf32>
    %119 = arith.addf %116, %118 : vector<1x128xf32>
    %120 = arith.negf %119 : vector<1x128xf32>
    %121 = math.exp %120 : vector<1x128xf32>
    %cst_44 = arith.constant 1.000000e+00 : f32
    %122 = vector.broadcast %cst_44 : f32 to vector<1x128xf32>
    %123 = arith.addf %122, %121 : vector<1x128xf32>
    %124 = arith.divf %122, %123 : vector<1x128xf32>
    %125 = math.tanh %119 : vector<1x128xf32>
    %126 = vector.extract_strided_slice %124 {offsets = [0, 32], sizes = [1, 32], strides = [1, 1]} : vector<1x128xf32> to vector<1x32xf32>
    %127 = arith.mulf %126, %112 : vector<1x32xf32>
    %128 = vector.extract_strided_slice %124 {offsets = [0, 0], sizes = [1, 32], strides = [1, 1]} : vector<1x128xf32> to vector<1x32xf32>
    %129 = vector.extract_strided_slice %125 {offsets = [0, 64], sizes = [1, 32], strides = [1, 1]} : vector<1x128xf32> to vector<1x32xf32>
    %130 = arith.mulf %128, %129 : vector<1x32xf32>
    %131 = arith.addf %127, %130 : vector<1x32xf32>
    %132 = vector.extract_strided_slice %124 {offsets = [0, 96], sizes = [1, 32], strides = [1, 1]} : vector<1x128xf32> to vector<1x32xf32>
    %133 = math.tanh %131 : vector<1x32xf32>
    %134 = arith.mulf %132, %133 : vector<1x32xf32>
    %135 = vector.extract_strided_slice %38 {offsets = [4, 0], sizes = [1, 128], strides = [1, 1]} : vector<8x256xf32> to vector<1x128xf32>
    %136 = arith.truncf %134 : vector<1x32xf32> to vector<1x32xbf16>
    %cst_45 = arith.constant dense<0.000000e+00> : vector<1x128xf32>
    %137 = tpu.matmul %136, %56, %cst_45 {dimension_numbers = #tpu.dot_dimension_numbers<[1], [0], [0], [1], [0, 0, 1, 1], [], []>} : vector<1x32xbf16>, vector<32x128xbf16>, vector<1x128xf32> -> vector<1x128xf32>
    %138 = arith.addf %135, %137 : vector<1x128xf32>
    %139 = arith.negf %138 : vector<1x128xf32>
    %140 = math.exp %139 : vector<1x128xf32>
    %cst_46 = arith.constant 1.000000e+00 : f32
    %141 = vector.broadcast %cst_46 : f32 to vector<1x128xf32>
    %142 = arith.addf %141, %140 : vector<1x128xf32>
    %143 = arith.divf %141, %142 : vector<1x128xf32>
    %144 = math.tanh %138 : vector<1x128xf32>
    %145 = vector.extract_strided_slice %143 {offsets = [0, 32], sizes = [1, 32], strides = [1, 1]} : vector<1x128xf32> to vector<1x32xf32>
    %146 = arith.mulf %145, %131 : vector<1x32xf32>
    %147 = vector.extract_strided_slice %143 {offsets = [0, 0], sizes = [1, 32], strides = [1, 1]} : vector<1x128xf32> to vector<1x32xf32>
    %148 = vector.extract_strided_slice %144 {offsets = [0, 64], sizes = [1, 32], strides = [1, 1]} : vector<1x128xf32> to vector<1x32xf32>
    %149 = arith.mulf %147, %148 : vector<1x32xf32>
    %150 = arith.addf %146, %149 : vector<1x32xf32>
    %151 = vector.extract_strided_slice %143 {offsets = [0, 96], sizes = [1, 32], strides = [1, 1]} : vector<1x128xf32> to vector<1x32xf32>
    %152 = math.tanh %150 : vector<1x32xf32>
    %153 = arith.mulf %151, %152 : vector<1x32xf32>
    %154 = vector.extract_strided_slice %38 {offsets = [5, 0], sizes = [1, 128], strides = [1, 1]} : vector<8x256xf32> to vector<1x128xf32>
    %155 = arith.truncf %153 : vector<1x32xf32> to vector<1x32xbf16>
    %cst_47 = arith.constant dense<0.000000e+00> : vector<1x128xf32>
    %156 = tpu.matmul %155, %56, %cst_47 {dimension_numbers = #tpu.dot_dimension_numbers<[1], [0], [0], [1], [0, 0, 1, 1], [], []>} : vector<1x32xbf16>, vector<32x128xbf16>, vector<1x128xf32> -> vector<1x128xf32>
    %157 = arith.addf %154, %156 : vector<1x128xf32>
    %158 = arith.negf %157 : vector<1x128xf32>
    %159 = math.exp %158 : vector<1x128xf32>
    %cst_48 = arith.constant 1.000000e+00 : f32
    %160 = vector.broadcast %cst_48 : f32 to vector<1x128xf32>
    %161 = arith.addf %160, %159 : vector<1x128xf32>
    %162 = arith.divf %160, %161 : vector<1x128xf32>
    %163 = math.tanh %157 : vector<1x128xf32>
    %164 = vector.extract_strided_slice %162 {offsets = [0, 32], sizes = [1, 32], strides = [1, 1]} : vector<1x128xf32> to vector<1x32xf32>
    %165 = arith.mulf %164, %150 : vector<1x32xf32>
    %166 = vector.extract_strided_slice %162 {offsets = [0, 0], sizes = [1, 32], strides = [1, 1]} : vector<1x128xf32> to vector<1x32xf32>
    %167 = vector.extract_strided_slice %163 {offsets = [0, 64], sizes = [1, 32], strides = [1, 1]} : vector<1x128xf32> to vector<1x32xf32>
    %168 = arith.mulf %166, %167 : vector<1x32xf32>
    %169 = arith.addf %165, %168 : vector<1x32xf32>
    %170 = vector.extract_strided_slice %162 {offsets = [0, 96], sizes = [1, 32], strides = [1, 1]} : vector<1x128xf32> to vector<1x32xf32>
    %171 = math.tanh %169 : vector<1x32xf32>
    %172 = arith.mulf %170, %171 : vector<1x32xf32>
    %173 = vector.extract_strided_slice %38 {offsets = [6, 0], sizes = [1, 128], strides = [1, 1]} : vector<8x256xf32> to vector<1x128xf32>
    %174 = arith.truncf %172 : vector<1x32xf32> to vector<1x32xbf16>
    %cst_49 = arith.constant dense<0.000000e+00> : vector<1x128xf32>
    %175 = tpu.matmul %174, %56, %cst_49 {dimension_numbers = #tpu.dot_dimension_numbers<[1], [0], [0], [1], [0, 0, 1, 1], [], []>} : vector<1x32xbf16>, vector<32x128xbf16>, vector<1x128xf32> -> vector<1x128xf32>
    %176 = arith.addf %173, %175 : vector<1x128xf32>
    %177 = arith.negf %176 : vector<1x128xf32>
    %178 = math.exp %177 : vector<1x128xf32>
    %cst_50 = arith.constant 1.000000e+00 : f32
    %179 = vector.broadcast %cst_50 : f32 to vector<1x128xf32>
    %180 = arith.addf %179, %178 : vector<1x128xf32>
    %181 = arith.divf %179, %180 : vector<1x128xf32>
    %182 = math.tanh %176 : vector<1x128xf32>
    %183 = vector.extract_strided_slice %181 {offsets = [0, 32], sizes = [1, 32], strides = [1, 1]} : vector<1x128xf32> to vector<1x32xf32>
    %184 = arith.mulf %183, %169 : vector<1x32xf32>
    %185 = vector.extract_strided_slice %181 {offsets = [0, 0], sizes = [1, 32], strides = [1, 1]} : vector<1x128xf32> to vector<1x32xf32>
    %186 = vector.extract_strided_slice %182 {offsets = [0, 64], sizes = [1, 32], strides = [1, 1]} : vector<1x128xf32> to vector<1x32xf32>
    %187 = arith.mulf %185, %186 : vector<1x32xf32>
    %188 = arith.addf %184, %187 : vector<1x32xf32>
    %189 = vector.extract_strided_slice %181 {offsets = [0, 96], sizes = [1, 32], strides = [1, 1]} : vector<1x128xf32> to vector<1x32xf32>
    %190 = math.tanh %188 : vector<1x32xf32>
    %191 = arith.mulf %189, %190 : vector<1x32xf32>
    %192 = vector.extract_strided_slice %38 {offsets = [7, 0], sizes = [1, 128], strides = [1, 1]} : vector<8x256xf32> to vector<1x128xf32>
    %193 = arith.truncf %191 : vector<1x32xf32> to vector<1x32xbf16>
    %cst_51 = arith.constant dense<0.000000e+00> : vector<1x128xf32>
    %194 = tpu.matmul %193, %56, %cst_51 {dimension_numbers = #tpu.dot_dimension_numbers<[1], [0], [0], [1], [0, 0, 1, 1], [], []>} : vector<1x32xbf16>, vector<32x128xbf16>, vector<1x128xf32> -> vector<1x128xf32>
    %195 = arith.addf %192, %194 : vector<1x128xf32>
    %196 = arith.negf %195 : vector<1x128xf32>
    %197 = math.exp %196 : vector<1x128xf32>
    %cst_52 = arith.constant 1.000000e+00 : f32
    %198 = vector.broadcast %cst_52 : f32 to vector<1x128xf32>
    %199 = arith.addf %198, %197 : vector<1x128xf32>
    %200 = arith.divf %198, %199 : vector<1x128xf32>
    %201 = math.tanh %195 : vector<1x128xf32>
    %202 = vector.extract_strided_slice %200 {offsets = [0, 32], sizes = [1, 32], strides = [1, 1]} : vector<1x128xf32> to vector<1x32xf32>
    %203 = arith.mulf %202, %188 : vector<1x32xf32>
    %204 = vector.extract_strided_slice %200 {offsets = [0, 0], sizes = [1, 32], strides = [1, 1]} : vector<1x128xf32> to vector<1x32xf32>
    %205 = vector.extract_strided_slice %201 {offsets = [0, 64], sizes = [1, 32], strides = [1, 1]} : vector<1x128xf32> to vector<1x32xf32>
    %206 = arith.mulf %204, %205 : vector<1x32xf32>
    %207 = arith.addf %203, %206 : vector<1x32xf32>
    %208 = vector.extract_strided_slice %200 {offsets = [0, 96], sizes = [1, 32], strides = [1, 1]} : vector<1x128xf32> to vector<1x32xf32>
    %209 = math.tanh %207 : vector<1x32xf32>
    %210 = arith.mulf %208, %209 : vector<1x32xf32>
    %c8 = arith.constant 8 : index
    %c0_53 = arith.constant 0 : index
    %211 = vector.load %arg3[%c8, %c0_53] : memref<80x256xf32, #tpu.memory_space<vmem>>, vector<32x32xf32>
    %cst_54 = arith.constant dense<0.000000e+00> : vector<1x32xf32>
    %212 = tpu.matmul %210, %211, %cst_54 {dimension_numbers = #tpu.dot_dimension_numbers<[1], [0], [0], [1], [0, 0, 1, 1], [], []>} : vector<1x32xf32>, vector<32x32xf32>, vector<1x32xf32> -> vector<1x32xf32>
    %213 = arith.addf %212, %55 : vector<1x32xf32>
    %c0_55 = arith.constant 0 : index
    %c0_56 = arith.constant 0 : index
    %214 = vector.load %arg4[%c0_55, %c0_56] : memref<1x32xf32, #tpu.memory_space<vmem>>, vector<1x32xf32>
    tpu.vector_store %arg4[%c0_55, %c0_56], %213 {strides = array<i32>} : memref<1x32xf32, #tpu.memory_space<vmem>>, vector<1x32xf32>,
    return
  }
}

</mosaic_0001>

<bundles_post_ra>
// kernel: tpu_custom_call.1
= control target key start
LH: loop header
LB: loop body
LE: loop exit
PB: predicated region body
PF: predicated region fallthrough
CT: control target
= control target key end

     0   :  { %9 = vsyncpa [#allocation6], 0  ;;  %s1557_s0 = inlined_call_operand.vmem [shape: s32[8], index: 0, kind: input, shape index: {}]   ;;  %s1558_s1 = inlined_call_operand.vmem [shape: f32[50,32], index: 1, kind: input, shape index: {}]   ;;  %s1559_s2 = inlined_call_operand.vmem [shape: bf16[64,256], index: 2, kind: input, shape index: {}]   ;;  %s1560_s3 = inlined_call_operand.hbm [shape: f32[80,256], index: 3, kind: input, shape index: {}]   ;;  %s1561_s4 = inlined_call_operand.hbm [shape: f32[1,32], index: 4, kind: output, shape index: {}]  }
   0x1   :  { %10 = vsyncpa [#allocation4], 0 }
   0x2   :  { %11 = vsyncpa [#allocation5], 0  ;;  %s18_s17 = sshll.u32 %s1557_s0, 4  ;;  %s19_s17 = int_to_ptr.vmem [resolvable:$true] %s18_s17 }
   0x3   :  { %s1266_s18 = scalar_lea.vmem %s19_s17, 16  ;;  %p1271_p1 = scmp.lt.s32.totalorder %s19_s17, %s19_s17 }
   0x4   :  { %p1267_p0 = scmp.ne.s32.totalorder %s19_s17, %s1266_s18  ;;  %p1272_p2 = scmp.lt.s32.totalorder %s1266_s18, %s1266_s18 }
   0x6   :  { %p1273_p3 = por %p1272_p2, %p1271_p1 }
   0x8   :  { %p1274_p4 = pnand %p1273_p3, %p1267_p0 }
   0xa   :  { %1277 = shalt.err (!%p1274_p4)
}
   0xb   :  { %s1328_s19 = smov [#allocation3]   ;;  %s1329_s20 = smov [#allocation7]  }
   0xc   :  { %21 = dma.vmem_to_smem %s19_s17, 16, %s1328_s19, [#allocation6]  }
   0xd   :  { %s31_s21 = sshll.u32 %s1329_s20, 4  ;;  %s1278_s24 = scalar_lea.hbm %s1560_s3, 2560  ;;  %s32_s21 = int_to_ptr.vmem [resolvable:$true] %s31_s21 }
   0xe   :  { %p1279_p5 = scmp.ne.s32.totalorder %s1560_s3, %s1278_s24  ;;  %p1282_p6 = scmp.lt.u32.totalorder %s1278_s24, %s1560_s3 }
  0x10   :  { %p1284_p7 = pnand %p1282_p6, %p1279_p5 }
  0x12   :  { %1287 = shalt.err (!%p1284_p7)
}
  0x13   :  { %s1288_s28 = scalar_lea.vmem %s32_s21, 2560  ;;  %p1293_p9 = scmp.lt.s32.totalorder %s32_s21, %s32_s21 }
  0x14   :  { %p1289_p8 = scmp.ne.s32.totalorder %s32_s21, %s1288_s28  ;;  %p1294_p10 = scmp.lt.s32.totalorder %s1288_s28, %s1288_s28 }
  0x16   :  { %p1295_p11 = por %p1294_p10, %p1293_p9 }
  0x18   :  { %p1296_p12 = pnand %p1295_p11, %p1289_p8 }
  0x1a   :  { %1299 = shalt.err (!%p1296_p12)
}
  0x1b   :  { %s1330_s29 = smov 256   ;;  %s1331_s30 = smov 16  }
  0x1c   :  { %37 = dma.hbm_to_vmem [thread:$0]  %s1560_s3, 2560, %s32_s21, [#allocation4], %s1330_s29, %s1330_s29, %s1331_s30  }
  0x1d   :  { %1322 = dma.done.wait [#allocation6], 16  }
  0x1e   :  { %1323 = vsyncadd [#allocation6], 4294967280 }
  0x1f   :  { %1324 = dma.done.wait [#allocation4], 2560  }
  0x20   :  { %1325 = vsyncadd [#allocation4], 4294964736 }
  0x21   :  { %44 = sfence }
  0x22   :  { %v1186_v0 = vld [vmem:[%s1559_s2 + $0x4] ss:$8 sps:$4 sm:$0xff]   ;;  %v1188_v1 = vld [vmem:[%s1559_s2] ss:$8 sps:$4 sm:$0xff]   ;;  %v1332_v2 = vmov 0   ;;  %s46_s11 = sld [smem:[#allocation3]]  ;;  %v87_v18 = vlaneseq }
  0x23   :  { %153 = vmatprep.mubr.bf16.mxu0 %v1332_v2  ;;  %121 = vmatprep.subr.bf16.mxu0 %v1186_v0  ;;  %v1189_v3 = vld [vmem:[%s1559_s2 + $0x14] ss:$8 sps:$4 sm:$0xff]   ;;  %v1191_v4 = vld [vmem:[%s1559_s2 + $0x10] ss:$8 sps:$4 sm:$0xff]   ;;  %s1007_s15 = sld [smem:[#allocation3 + $0x1]]  ;;  %s1008_s16 = sld [smem:[#allocation3 + $0x2]] }
  0x24   :  { %122 = vmatpush1.bf16.msra.mxu0 %v1188_v1  ;;  %s1009_s17 = sld [smem:[#allocation3 + $0x3]]  ;;  %s1010_s18 = sld [smem:[#allocation3 + $0x4]]  ;;  %vm49_vm0 = vcmask 253952   ;;  %v1333_v5 = vmov 0.0   ;;  %vm1334_vm1 = vmmov 0   ;;  %vm117_vm2 = vcmask 261120  }
  0x25   :  { %123 = vmatprep.subr.bf16.mxu0 %v1189_v3  ;;  %s1011_s19 = sld [smem:[#allocation3 + $0x5]]  ;;  %s1012_s20 = sld [smem:[#allocation3 + $0x6]]  ;;  %1081 = vmatprep.mubr.msk.f32.mxu1 %vm1334_vm1, %v1333_v5  ;;  %v1430_v15 = vld [vmem:[%s1559_s2 + $0x20] ss:$8 sps:$4 sm:$0xff]   ;;  %v1437_v17 = vld [vmem:[%s1559_s2 + $0x30] ss:$8 sps:$4 sm:$0xff]  }
  0x26   :  { %s1013_s21 = sld [smem:[#allocation3 + $0x7]]  ;;  %v88_v19 = vshrl.u32 %v87_v18, 7  ;;  %v79_v21 = vld [vmem:[#allocation7] ss:$8 sm:$0x3]  ;;  %s1335_s2 = smov 64  }
  0x27   :  { %v180_v50 = vld [vmem:[#allocation7 + $0x50] sm:$0xff]  ;;  %v181_v51 = vld [vmem:[#allocation7 + $0x60] sm:$0xff]  ;;  %v1337_v52 = vmov 0.0|0.0   ;;  %s1338_s22 = smov 96   ;;  %s1339_s23 = smov [#allocation8]  }
  0x28   :  { %124 = vmatpush1.bf16.msra.mxu0 %v1191_v4  ;;  %s47_s24 = scalar_lea.vmem %s1558_s1, %s46_s11  ;;  %v89_v20 = vsub.s32 0, %v88_v19  ;;  %v93_v26 = vsub.s32 1, %v88_v19  ;;  %1159 = vmatprep.subr.bf16.mxu1 %v1337_v52  ;;  %v1160_v53 = vpack.c.bf16 %v181_v51, %v180_v50  ;;  %v182_v58 = vld [vmem:[#allocation7 + $0x70] sm:$0xff]  ;;  %v183_v59 = vld [vmem:[#allocation7 + $0x80] sm:$0xff] }
  0x29   :  { %1084 = vmatprep.subr.bf16.mxu0 %v1333_v5  ;;  %v48_v6 = vld [vmem:[%s47_s24] sm:$0x1]  ;;  %s52_s0 = scalar_lea.vmem %s1558_s1, %s1007_s15  ;;  %s56_s29 = scalar_lea.vmem %s1558_s1, %s1008_s16  ;;  %v1163_v60 = vpack.c.bf16 %v183_v59, %v182_v58 }
  0x2a   :  { %50 = vst.msk [vmem:[#allocation2] sm:$0x1] %vm49_vm0, %v48_v6  ;;  %v53_v7 = vld [vmem:[%s52_s0] sm:$0x1]  ;;  %s60_s6 = scalar_lea.vmem %s1558_s1, %s1009_s17  ;;  %s64_s9 = scalar_lea.vmem %s1558_s1, %s1010_s18  ;;  %v90_v25 = vrot.slane %v79_v21, %v89_v20  ;;  %v94_v29 = vrot.slane %v79_v21, %v93_v26  ;;  %1161 = vmatpush3.bf16.msra.mxu1 %v1160_v53 }
  0x2b   :  { %v57_v8 = vld [vmem:[%s56_s29] sm:$0x1]  ;;  %54 = vst.msk [vmem:[#allocation2 + $0x1] sm:$0x1] %vm49_vm0, %v53_v7  ;;  %s68_s12 = scalar_lea.vmem %s1558_s1, %s1011_s19  ;;  %s72_s14 = scalar_lea.vmem %s1558_s1, %s1012_s20  ;;  %1162 = vmatprep.subr.bf16.mxu1 %v1337_v52 }
  0x2c   :  { %58 = vst.msk [vmem:[#allocation2 + $0x2] sm:$0x1] %vm49_vm0, %v57_v8  ;;  %v61_v9 = vld [vmem:[%s60_s6] sm:$0x1]  ;;  %s76_s17 = scalar_lea.vmem %s1558_s1, %s1013_s21  ;;  %s1336_s21 = smov 32  }
  0x2d   :  { %v65_v10 = vld [vmem:[%s64_s9] sm:$0x1]  ;;  %62 = vst.msk [vmem:[#allocation2 + $0x3] sm:$0x1] %vm49_vm0, %v61_v9  ;;  %s989_s24 = sshll.u32 %s1339_s23, 4  ;;  %s990_s24 = int_to_ptr.vmem [resolvable:$true] %s989_s24 }
  0x2e   :  { %66 = vst.msk [vmem:[#allocation2 + $0x4] sm:$0x1] %vm49_vm0, %v65_v10  ;;  %v69_v11 = vld [vmem:[%s68_s12] sm:$0x1]  ;;  %1164 = vmatpush3.bf16.msra.mxu1 %v1163_v60  ;;  %s1300_s25 = scalar_lea.vmem %s990_s24, 16  ;;  %s1304_s26 = scalar_lea.vmem %s990_s24, 32 }
  0x2f   :  { %v73_v12 = vld [vmem:[%s72_s14] sm:$0x1]  ;;  %70 = vst.msk [vmem:[#allocation2 + $0x5] sm:$0x1] %vm49_vm0, %v69_v11  ;;  %1092 = vmatprep.subr.bf16.mxu1 %v1333_v5  ;;  %p1301_p13 = scmp.ne.s32.totalorder %s990_s24, %s1300_s25  ;;  %p1305_p0 = scmp.lt.s32.totalorder %s990_s24, %s990_s24 }
  0x30   :  { %74 = vst.msk [vmem:[#allocation2 + $0x6] sm:$0x1] %vm49_vm0, %v73_v12  ;;  %v77_v13 = vld [vmem:[%s76_s17] sm:$0x1]  ;;  %p1306_p1 = scmp.lt.s32.totalorder %s1304_s26, %s1300_s25 }
  0x31   :  { %78 = vst.msk [vmem:[#allocation2 + $0x7] sm:$0x1] %vm49_vm0, %v77_v13 }
  0x32   :  { %p1307_p2 = por %p1306_p1, %p1305_p0 }
  0x34   :  { %p1308_p3 = pnand %p1307_p2, %p1301_p13 }
  0x38   :  { %v80_v14 = vld [vmem:[#allocation2] sm:$0xff] }
  0x39   :  { %v81_v16 = vpack.c.bf16 %v80_v14, %v80_v14 }
  0x3b   :  { %1018 = vmatmul.mubr.msk.bf16.vlgmr.msra.gmra.mrb[0].mxu0 %vm117_vm2, %v81_v16 }
  0x3c   :  { %1085 = vmatpush3.bf16.msra.mxu0 %v1430_v15  ;;  %1088 = vmatprep.mubr.msk.bf16.mxu0 %vm1334_vm1, %v1333_v5 }
  0x3d   :  { %1086 = vmatprep.subr.bf16.mxu0 %v1333_v5 }
  0x40   :  { %1087 = vmatpush3.bf16.msra.mxu0 %v1437_v17 }
  0x41   :  { %1100 = vmatprep.subr.bf16.mxu0 %v1333_v5 }
  0x43   :  { %1089 = vmatmul.mubr.bf16.vlgmr.msra.gmra.mrb[4].mxu0 %v1332_v2 }
  0x44   :  { %1101 = vmatpush3.bf16.msra.mxu0 %v1430_v15  ;;  %1104 = vmatprep.mubr.msk.bf16.mxu0 %vm1334_vm1, %v1333_v5 }
  0x45   :  { %1102 = vmatprep.subr.bf16.mxu0 %v1333_v5 }
  0x48   :  { %1103 = vmatpush3.bf16.msra.mxu0 %v1437_v17 }
  0x49   :  { %1116 = vmatprep.subr.bf16.mxu0 %v1333_v5 }
 0x10e   :  { %v155_v22 = vpop.f32.mrb[0].mxu0 }
 0x10f   :  { %v157_v23 = vpop.f32.mrb[1].mxu0  ;;  %v1450_v28 = vadd.f32 %v155_v22, %v90_v25 }
 0x110   :  { %v159_v24 = vpop.f32.mrb[2].mxu0  ;;  %v158_v34 = vadd.f32 %v157_v23, %v94_v29 }
 0x111   :  { %v160_v27 = vpop.f32.mrb[3].mxu0 }
 0x112   :  { %v1019_v39 = vmul.f32 -1.442695, %v158_v34 }
 0x116   :  { %v314_v30 = vpop.f32.mrb[4].mxu0 }
 0x117   :  { %v320_v31 = vadd.f32 %v314_v30, %v1450_v28  ;;  %v1090_v32 = vpop.f32.mrb[5].mxu0 }
 0x118   :  { %v317_v33 = vpop.f32.mrb[6].mxu0 }
 0x119   :  { %1194 = vtanh.f32 %v320_v31  ;;  %v1091_v35 = vpop.f32.mrb[7].mxu0  ;;  %v1023_v38 = vmul.f32 -1.442695, %v320_v31 }
 0x11a   :  { %1196 = vtanh.f32 %v158_v34 }
 0x11b   :  { %1198 = vpow2.f32 %v1023_v38 }
 0x11c   :  { %1200 = vpow2.f32 %v1019_v39 }
 0x123   :  { %v1195_v36 = vpop.eup %1194 }
 0x124   :  { %330 = vrot.lane.b32.xlu0 %v1195_v36, %s1335_s2  ;;  %v1197_v37 = vpop.eup %1196 }
 0x125   :  { %v1199_v40 = vpop.eup %1198 }
 0x126   :  { %v324_v41 = vadd.f32 1.0, %v1199_v40  ;;  %v1201_v42 = vpop.eup %1200 }
 0x127   :  { %v165_v43 = vadd.f32 1.0, %v1201_v42 }
 0x128   :  { %170 = vrot.lane.b32.xlu0 %v1197_v37, %s1335_s2  ;;  %1202 = vrcp.f32 %v324_v41 }
 0x129   :  { %1204 = vrcp.f32 %v165_v43 }
 0x132   :  { %v1203_v44 = vpop.eup %1202 }
 0x133   :  { %v1205_v47 = vpop.eup %1204  ;;  %v328_v55 = vmul.f32 0.0, %v1203_v44 }
 0x196   :  { %v331_v45 = vpop.permute.xlu0 %330 }
 0x197   :  { %v333_v46 = vmul.f32 %v1203_v44, %v331_v45 }
 0x199   :  { %335 = vrot.lane.b32.xlu1 %v333_v46, %s1336_s21 }
 0x19a   :  { %v171_v48 = vpop.permute.xlu0 %170 }
 0x19b   :  { %v173_v49 = vmul.f32 %v1205_v47, %v171_v48 }
 0x19d   :  { %1206 = vtanh.f32 %v173_v49 }
 0x1a7   :  { %v1207_v54 = vpop.eup %1206 }
 0x1a8   :  { %176 = vrot.lane.b32.xlu1 %v1207_v54, %s1338_s22 }
 0x20b   :  { %v336_v56 = vpop.permute.xlu1 %335 }
 0x20c   :  { %v338_v57 = vadd.f32 %v336_v56, %v328_v55 }
 0x20e   :  { %1208 = vtanh.f32 %v338_v57  ;;  %v404_v22 = vrot.slane %v338_v57, 7 }
 0x218   :  { %v1209_v61 = vpop.eup %1208 }
 0x219   :  { %341 = vrot.lane.b32.xlu0 %v1209_v61, %s1335_s2 }
 0x21a   :  { %v177_v62 = vpop.permute.xlu1 %176 }
 0x21b   :  { %v179_v63 = vmul.f32 %v1205_v47, %v177_v62 }
 0x21d   :  { %v186_v0 = vrot.slane %v179_v63, 7 }
 0x21f   :  { %187 = vrot.lane.b32.xlu1 %v186_v0, %s1336_s21 }
 0x28b   :  { %v342_v1 = vpop.permute.xlu0 %341 }
 0x28c   :  { %v344_v2 = vmul.f32 %v1203_v44, %v342_v1 }
 0x28e   :  { %v345_v3 = vpack.c.bf16 %v344_v2, %v344_v2 }
 0x290   :  { %347 = vrot.lane.b32.xlu0 %v345_v3, %s1336_s21 }
 0x291   :  { %v188_v4 = vpop.permute.xlu1 %187 }
 0x292   :  { %1082 = vmatmul.mubr.msk.f32.vlgmr.msra.gmra.mrb[0].mxu1 %vm117_vm2, %v188_v4 }
 0x293   :  { %1093 = vmatpush3.bf16.msra.mxu1 %v1430_v15  ;;  %1096 = vmatprep.mubr.msk.bf16.mxu1 %vm1334_vm1, %v1333_v5 }
 0x294   :  { %1094 = vmatprep.subr.bf16.mxu1 %v1333_v5 }
 0x297   :  { %1095 = vmatpush3.bf16.msra.mxu1 %v1437_v17 }
 0x298   :  { %1108 = vmatprep.subr.bf16.mxu1 %v1333_v5 }
 0x302   :  { %v348_v6 = vpop.permute.xlu0 %347 }
 0x303   :  { %1097 = vmatmul.mubr.msk.bf16.vlgmr.msra.gmra.mrb[4].mxu1 %vm117_vm2, %v348_v6 }
 0x304   :  { %1109 = vmatpush3.bf16.msra.mxu1 %v1430_v15  ;;  %1112 = vmatprep.mubr.msk.bf16.mxu1 %vm1334_vm1, %v1333_v5 }
 0x305   :  { %1110 = vmatprep.subr.bf16.mxu1 %v1333_v5 }
 0x308   :  { %1111 = vmatpush3.bf16.msra.mxu1 %v1437_v17 }
 0x309   :  { %1124 = vmatprep.subr.bf16.mxu1 %v1333_v5 }
 0x3d6   :  { %v386_v7 = vpop.f32.mrb[4].mxu1 }
 0x3d7   :  { %v393_v8 = vrot.slane %v386_v7, 7  ;;  %v1098_v9 = vpop.f32.mrb[5].mxu1 }
 0x3d8   :  { %v389_v10 = vpop.f32.mrb[6].mxu1 }
 0x3d9   :  { %v395_v11 = vadd.f32 %v393_v8, %v1450_v28  ;;  %v1099_v12 = vpop.f32.mrb[7].mxu1 }
 0x3db   :  { %1210 = vtanh.f32 %v395_v11  ;;  %v1025_v14 = vmul.f32 -1.442695, %v395_v11 }
 0x3dd   :  { %1212 = vpow2.f32 %v1025_v14 }
 0x3e5   :  { %v1211_v13 = vpop.eup %1210 }
 0x3e6   :  { %408 = vrot.lane.b32.xlu1 %v1211_v13, %s1335_s2 }
 0x3e7   :  { %v1213_v16 = vpop.eup %1212 }
 0x3e8   :  { %v399_v18 = vadd.f32 1.0, %v1213_v16 }
 0x3ea   :  { %1214 = vrcp.f32 %v399_v18 }
 0x3f4   :  { %v1215_v19 = vpop.eup %1214 }
 0x3f5   :  { %v406_v23 = vmul.f32 %v1215_v19, %v404_v22 }
 0x458   :  { %v409_v20 = vpop.permute.xlu1 %408 }
 0x459   :  { %v411_v21 = vmul.f32 %v1215_v19, %v409_v20 }
 0x45b   :  { %413 = vrot.lane.b32.xlu0 %v411_v21, %s1336_s21 }
 0x4cd   :  { %v414_v24 = vpop.permute.xlu0 %413 }
 0x4ce   :  { %v416_v25 = vadd.f32 %v414_v24, %v406_v23 }
 0x4d0   :  { %1216 = vtanh.f32 %v416_v25  ;;  %v484_v46 = vrot.slane %v416_v25, 7 }
 0x4da   :  { %v1217_v26 = vpop.eup %1216 }
 0x4db   :  { %419 = vrot.lane.b32.xlu1 %v1217_v26, %s1335_s2 }
 0x54d   :  { %v420_v27 = vpop.permute.xlu1 %419 }
 0x54e   :  { %v422_v29 = vmul.f32 %v1215_v19, %v420_v27 }
 0x550   :  { %v423_v30 = vpack.c.bf16 %v422_v29, %v422_v29 }
 0x552   :  { %v425_v31 = vshrl.u32 %v423_v30, 16 }
 0x554   :  { %427 = vrot.lane.b32.xlu0 %v425_v31, %s1336_s21 }
 0x5c6   :  { %v428_v32 = vpop.permute.xlu0 %427 }
 0x5c7   :  { %1105 = vmatmul.mubr.msk.bf16.vlgmr.msra.gmra.mrb[8].mxu0 %vm117_vm2, %v428_v32 }
 0x5c8   :  { %1117 = vmatpush3.bf16.msra.mxu0 %v1430_v15  ;;  %1120 = vmatprep.mubr.msk.bf16.mxu0 %vm1334_vm1, %v1333_v5 }
 0x5c9   :  { %1118 = vmatprep.subr.bf16.mxu0 %v1333_v5 }
 0x5cc   :  { %1119 = vmatpush3.bf16.msra.mxu0 %v1437_v17 }
 0x5cd   :  { %1132 = vmatprep.subr.bf16.mxu0 %v1333_v5 }
 0x69a   :  { %v466_v33 = vpop.f32.mrb[8].mxu0 }
 0x69b   :  { %v473_v34 = vrot.slane %v466_v33, 6  ;;  %v1106_v35 = vpop.f32.mrb[9].mxu0 }
 0x69c   :  { %v469_v36 = vpop.f32.mrb[10].mxu0 }
 0x69d   :  { %v475_v37 = vadd.f32 %v473_v34, %v1450_v28  ;;  %v1107_v38 = vpop.f32.mrb[11].mxu0 }
 0x69f   :  { %1218 = vtanh.f32 %v475_v37  ;;  %v1027_v40 = vmul.f32 -1.442695, %v475_v37 }
 0x6a1   :  { %1220 = vpow2.f32 %v1027_v40 }
 0x6a9   :  { %v1219_v39 = vpop.eup %1218 }
 0x6aa   :  { %488 = vrot.lane.b32.xlu1 %v1219_v39, %s1335_s2 }
 0x6ab   :  { %v1221_v41 = vpop.eup %1220 }
 0x6ac   :  { %v479_v42 = vadd.f32 1.0, %v1221_v41 }
 0x6ae   :  { %1222 = vrcp.f32 %v479_v42 }
 0x6b8   :  { %v1223_v43 = vpop.eup %1222 }
 0x6b9   :  { %v486_v47 = vmul.f32 %v1223_v43, %v484_v46 }
 0x71c   :  { %v489_v44 = vpop.permute.xlu1 %488 }
 0x71d   :  { %v491_v45 = vmul.f32 %v1223_v43, %v489_v44 }
 0x71f   :  { %493 = vrot.lane.b32.xlu0 %v491_v45, %s1336_s21 }
 0x791   :  { %v494_v48 = vpop.permute.xlu0 %493 }
 0x792   :  { %v496_v49 = vadd.f32 %v494_v48, %v486_v47 }
 0x794   :  { %1224 = vtanh.f32 %v496_v49  ;;  %v563_v7 = vrot.slane %v496_v49, 7 }
 0x79e   :  { %v1225_v50 = vpop.eup %1224 }
 0x79f   :  { %499 = vrot.lane.b32.xlu1 %v1225_v50, %s1335_s2 }
 0x811   :  { %v500_v51 = vpop.permute.xlu1 %499 }
 0x812   :  { %v502_v53 = vmul.f32 %v1223_v43, %v500_v51 }
 0x814   :  { %v503_v54 = vpack.c.bf16 %v502_v53, %v502_v53 }
 0x816   :  { %v505_v55 = vrot.slane %v503_v54, 1 }
 0x818   :  { %506 = vrot.lane.b32.xlu0 %v505_v55, %s1336_s21 }
 0x88a   :  { %v507_v56 = vpop.permute.xlu0 %506 }
 0x88b   :  { %1113 = vmatmul.mubr.msk.bf16.vlgmr.msra.gmra.mrb[8].mxu1 %vm117_vm2, %v507_v56 }
 0x88c   :  { %1125 = vmatpush3.bf16.msra.mxu1 %v1430_v15  ;;  %1128 = vmatprep.mubr.msk.bf16.mxu1 %vm1334_vm1, %v1333_v5 }
 0x88d   :  { %1126 = vmatprep.subr.bf16.mxu1 %v1333_v5 }
 0x890   :  { %1127 = vmatpush3.bf16.msra.mxu1 %v1437_v17 }
 0x891   :  { %1140 = vmatprep.subr.bf16.mxu1 %v1333_v5 }
 0x95e   :  { %v545_v57 = vpop.f32.mrb[8].mxu1 }
 0x95f   :  { %v552_v58 = vrot.slane %v545_v57, 5  ;;  %v1114_v59 = vpop.f32.mrb[9].mxu1 }
 0x960   :  { %v548_v60 = vpop.f32.mrb[10].mxu1 }
 0x961   :  { %v554_v61 = vadd.f32 %v552_v58, %v1450_v28  ;;  %v1115_v62 = vpop.f32.mrb[11].mxu1 }
 0x963   :  { %1226 = vtanh.f32 %v554_v61  ;;  %v1029_v0 = vmul.f32 -1.442695, %v554_v61 }
 0x965   :  { %1228 = vpow2.f32 %v1029_v0 }
 0x96d   :  { %v1227_v63 = vpop.eup %1226 }
 0x96e   :  { %567 = vrot.lane.b32.xlu1 %v1227_v63, %s1335_s2 }
 0x96f   :  { %v1229_v1 = vpop.eup %1228 }
 0x970   :  { %v558_v2 = vadd.f32 1.0, %v1229_v1 }
 0x972   :  { %1230 = vrcp.f32 %v558_v2 }
 0x97c   :  { %v1231_v3 = vpop.eup %1230 }
 0x97d   :  { %v565_v8 = vmul.f32 %v1231_v3, %v563_v7 }
 0x9e0   :  { %v568_v4 = vpop.permute.xlu1 %567 }
 0x9e1   :  { %v570_v6 = vmul.f32 %v1231_v3, %v568_v4 }
 0x9e3   :  { %572 = vrot.lane.b32.xlu0 %v570_v6, %s1336_s21 }
 0xa55   :  { %v573_v9 = vpop.permute.xlu0 %572 }
 0xa56   :  { %v575_v10 = vadd.f32 %v573_v9, %v565_v8 }
 0xa58   :  { %1232 = vtanh.f32 %v575_v10  ;;  %v644_v34 = vrot.slane %v575_v10, 7 }
 0xa62   :  { %v1233_v11 = vpop.eup %1232 }
 0xa63   :  { %578 = vrot.lane.b32.xlu1 %v1233_v11, %s1335_s2 }
 0xad5   :  { %v579_v12 = vpop.permute.xlu1 %578 }
 0xad6   :  { %v581_v13 = vmul.f32 %v1231_v3, %v579_v12 }
 0xad8   :  { %v582_v14 = vpack.c.bf16 %v581_v13, %v581_v13 }
 0xada   :  { %v584_v16 = vshrl.u32 %v582_v14, 16 }
 0xadc   :  { %v586_v18 = vrot.slane %v584_v16, 1 }
 0xade   :  { %587 = vrot.lane.b32.xlu0 %v586_v18, %s1336_s21 }
 0xb50   :  { %v588_v19 = vpop.permute.xlu0 %587 }
 0xb51   :  { %1121 = vmatmul.mubr.msk.bf16.vlgmr.msra.gmra.mrb[12].mxu0 %vm117_vm2, %v588_v19 }
 0xb52   :  { %1133 = vmatpush3.bf16.msra.mxu0 %v1430_v15  ;;  %1136 = vmatprep.mubr.msk.bf16.mxu0 %vm1334_vm1, %v1333_v5 }
 0xb53   :  { %1134 = vmatprep.subr.bf16.mxu0 %v1333_v5 }
 0xb56   :  { %1135 = vmatpush3.bf16.msra.mxu0 %v1437_v17 }
 0xc24   :  { %v626_v20 = vpop.f32.mrb[12].mxu0 }
 0xc25   :  { %v633_v21 = vrot.slane %v626_v20, 4  ;;  %v1122_v22 = vpop.f32.mrb[13].mxu0 }
 0xc26   :  { %v629_v23 = vpop.f32.mrb[14].mxu0 }
 0xc27   :  { %v635_v24 = vadd.f32 %v633_v21, %v1450_v28  ;;  %v1123_v25 = vpop.f32.mrb[15].mxu0 }
 0xc29   :  { %1234 = vtanh.f32 %v635_v24  ;;  %v1031_v27 = vmul.f32 -1.442695, %v635_v24 }
 0xc2b   :  { %1236 = vpow2.f32 %v1031_v27 }
 0xc33   :  { %v1235_v26 = vpop.eup %1234 }
 0xc34   :  { %648 = vrot.lane.b32.xlu1 %v1235_v26, %s1335_s2 }
 0xc35   :  { %v1237_v29 = vpop.eup %1236 }
 0xc36   :  { %v639_v30 = vadd.f32 1.0, %v1237_v29 }
 0xc38   :  { %1238 = vrcp.f32 %v639_v30 }
 0xc42   :  { %v1239_v31 = vpop.eup %1238 }
 0xc43   :  { %v646_v35 = vmul.f32 %v1239_v31, %v644_v34 }
 0xca6   :  { %v649_v32 = vpop.permute.xlu1 %648 }
 0xca7   :  { %v651_v33 = vmul.f32 %v1239_v31, %v649_v32 }
 0xca9   :  { %653 = vrot.lane.b32.xlu0 %v651_v33, %s1336_s21 }
 0xd1b   :  { %v654_v36 = vpop.permute.xlu0 %653 }
 0xd1c   :  { %v656_v37 = vadd.f32 %v654_v36, %v646_v35 }
 0xd1e   :  { %1240 = vtanh.f32 %v656_v37  ;;  %v723_v56 = vrot.slane %v656_v37, 7 }
 0xd28   :  { %v1241_v38 = vpop.eup %1240 }
 0xd29   :  { %659 = vrot.lane.b32.xlu1 %v1241_v38, %s1335_s2 }
 0xd9b   :  { %v660_v39 = vpop.permute.xlu1 %659 }
 0xd9c   :  { %v662_v40 = vmul.f32 %v1239_v31, %v660_v39 }
 0xd9e   :  { %v663_v41 = vpack.c.bf16 %v662_v40, %v662_v40 }
 0xda0   :  { %v665_v42 = vrot.slane %v663_v41, 2 }
 0xda2   :  { %666 = vrot.lane.b32.xlu0 %v665_v42, %s1336_s21 }
 0xe14   :  { %v667_v43 = vpop.permute.xlu0 %666 }
 0xe15   :  { %1129 = vmatmul.mubr.msk.bf16.vlgmr.msra.gmra.mrb[12].mxu1 %vm117_vm2, %v667_v43 }
 0xe16   :  { %1141 = vmatpush3.bf16.msra.mxu1 %v1430_v15  ;;  %1144 = vmatprep.mubr.msk.bf16.mxu1 %vm1334_vm1, %v1333_v5 }
 0xe17   :  { %1142 = vmatprep.subr.bf16.mxu1 %v1333_v5 }
 0xe1a   :  { %1143 = vmatpush3.bf16.msra.mxu1 %v1437_v17 }
 0xe1b   :  { %1165 = vmatprep.subr.bf16.mxu1 %v1337_v52 }
 0xee8   :  { %v705_v44 = vpop.f32.mrb[12].mxu1 }
 0xee9   :  { %v712_v45 = vrot.slane %v705_v44, 3  ;;  %v1130_v46 = vpop.f32.mrb[13].mxu1 }
 0xeea   :  { %v708_v47 = vpop.f32.mrb[14].mxu1  ;;  %v903_v46 = vld [vmem:[#allocation7 + $0x20] sm:$0xff] }
 0xeeb   :  { %v714_v48 = vadd.f32 %v712_v45, %v1450_v28  ;;  %v1131_v49 = vpop.f32.mrb[15].mxu1  ;;  %v904_v47 = vld [vmem:[#allocation7 + $0x30] sm:$0xff] }
 0xeec   :  { %v905_v49 = vld [vmem:[#allocation7 + $0x40] sm:$0xff] }
 0xeed   :  { %1242 = vtanh.f32 %v714_v48  ;;  %v1033_v15 = vmul.f32 -1.442695, %v714_v48 }
 0xeef   :  { %1244 = vpow2.f32 %v1033_v15 }
 0xef7   :  { %v1243_v50 = vpop.eup %1242 }
 0xef8   :  { %727 = vrot.lane.b32.xlu1 %v1243_v50, %s1335_s2  ;;  %v1169_v50 = vpack.c.bf16 %v905_v49, %v904_v47 }
 0xef9   :  { %v1245_v51 = vpop.eup %1244 }
 0xefa   :  { %v718_v53 = vadd.f32 1.0, %v1245_v51 }
 0xefc   :  { %1246 = vrcp.f32 %v718_v53 }
 0xf06   :  { %v1247_v54 = vpop.eup %1246 }
 0xf07   :  { %v725_v57 = vmul.f32 %v1247_v54, %v723_v56 }
 0xf6a   :  { %v728_v17 = vpop.permute.xlu1 %727 }
 0xf6b   :  { %v730_v55 = vmul.f32 %v1247_v54, %v728_v17 }
 0xf6d   :  { %732 = vrot.lane.b32.xlu0 %v730_v55, %s1336_s21  ;;  %v184_v55 = vld [vmem:[#allocation7 + $0x90] ss:$0 sm:$0xff] }
 0xfdf   :  { %v733_v58 = vpop.permute.xlu0 %732 }
 0xfe0   :  { %v735_v59 = vadd.f32 %v733_v58, %v725_v57 }
 0xfe2   :  { %1248 = vtanh.f32 %v735_v59  ;;  %v804_v19 = vrot.slane %v735_v59, 7 }
 0xfec   :  { %v1249_v60 = vpop.eup %1248 }
 0xfed   :  { %738 = vrot.lane.b32.xlu1 %v1249_v60, %s1335_s2 }
0x105f   :  { %v739_v61 = vpop.permute.xlu1 %738 }
0x1060   :  { %v741_v62 = vmul.f32 %v1247_v54, %v739_v61 }
0x1062   :  { %v742_v63 = vpack.c.bf16 %v741_v62, %v741_v62 }
0x1064   :  { %v744_v0 = vshrl.u32 %v742_v63, 16 }
0x1066   :  { %v746_v1 = vrot.slane %v744_v0, 2 }
0x1068   :  { %747 = vrot.lane.b32.xlu0 %v746_v1, %s1336_s21 }
0x10da   :  { %v748_v2 = vpop.permute.xlu0 %747 }
0x10db   :  { %1137 = vmatmul.mubr.msk.bf16.vlgmr.msra.gmra.mrb[16].mxu0 %vm117_vm2, %v748_v2 }
0x11ae   :  { %v786_v3 = vpop.f32.mrb[16].mxu0 }
0x11af   :  { %v793_v4 = vrot.slane %v786_v3, 2  ;;  %v1138_v6 = vpop.f32.mrb[17].mxu0 }
0x11b0   :  { %v789_v7 = vpop.f32.mrb[18].mxu0 }
0x11b1   :  { %v795_v8 = vadd.f32 %v793_v4, %v1450_v28  ;;  %v1139_v9 = vpop.f32.mrb[19].mxu0 }
0x11b3   :  { %1250 = vtanh.f32 %v795_v8  ;;  %v1035_v11 = vmul.f32 -1.442695, %v795_v8 }
0x11b5   :  { %1252 = vpow2.f32 %v1035_v11 }
0x11bd   :  { %v1251_v10 = vpop.eup %1250 }
0x11be   :  { %808 = vrot.lane.b32.xlu1 %v1251_v10, %s1335_s2 }
0x11bf   :  { %v1253_v12 = vpop.eup %1252 }
0x11c0   :  { %v799_v13 = vadd.f32 1.0, %v1253_v12 }
0x11c2   :  { %1254 = vrcp.f32 %v799_v13 }
0x11cc   :  { %v1255_v14 = vpop.eup %1254 }
0x11cd   :  { %v806_v20 = vmul.f32 %v1255_v14, %v804_v19 }
0x1230   :  { %v809_v16 = vpop.permute.xlu1 %808 }
0x1231   :  { %v811_v18 = vmul.f32 %v1255_v14, %v809_v16 }
0x1233   :  { %813 = vrot.lane.b32.xlu0 %v811_v18, %s1336_s21 }
0x12a5   :  { %v814_v21 = vpop.permute.xlu0 %813 }
0x12a6   :  { %v816_v22 = vadd.f32 %v814_v21, %v806_v20 }
0x12a8   :  { %1256 = vtanh.f32 %v816_v22 }
0x12b2   :  { %v1257_v23 = vpop.eup %1256 }
0x12b3   :  { %819 = vrot.lane.b32.xlu1 %v1257_v23, %s1335_s2 }
0x1325   :  { %v820_v24 = vpop.permute.xlu1 %819 }
0x1326   :  { %v822_v25 = vmul.f32 %v1255_v14, %v820_v24 }
0x1328   :  { %v823_v26 = vpack.c.bf16 %v822_v25, %v822_v25 }
0x132a   :  { %v825_v27 = vrot.slane %v823_v26, 3 }
0x132c   :  { %826 = vrot.lane.b32.xlu0 %v825_v27, %s1336_s21 }
0x139e   :  { %v827_v29 = vpop.permute.xlu0 %826 }
0x139f   :  { %1145 = vmatmul.mubr.msk.bf16.vlgmr.msra.gmra.mrb[16].mxu1 %vm117_vm2, %v827_v29 }
0x13a0   :  { %1156 = vmatprep.mubr.msk.f32.mxu1 %vm1334_vm1, %v1333_v5  ;;  %v883_v5 = vrot.slane %v816_v22, 7 }
0x1472   :  { %v865_v30 = vpop.f32.mrb[16].mxu1 }
0x1473   :  { %v872_v31 = vrot.slane %v865_v30, 1  ;;  %v1146_v32 = vpop.f32.mrb[17].mxu1 }
0x1474   :  { %v868_v33 = vpop.f32.mrb[18].mxu1 }
0x1475   :  { %v874_v34 = vadd.f32 %v872_v31, %v1450_v28  ;;  %v1147_v35 = vpop.f32.mrb[19].mxu1  ;;  %v902_v28 = vld [vmem:[#allocation7 + $0x10] sm:$0xff] }
0x1476   :  { %v1166_v48 = vpack.c.bf16 %v903_v46, %v902_v28 }
0x1477   :  { %1258 = vtanh.f32 %v874_v34  ;;  %v1037_v37 = vmul.f32 -1.442695, %v874_v34 }
0x1478   :  { %1167 = vmatpush3.bf16.msra.mxu1 %v1166_v48 }
0x1479   :  { %1260 = vpow2.f32 %v1037_v37  ;;  %1168 = vmatprep.subr.bf16.mxu1 %v1337_v52 }
0x147c   :  { %1170 = vmatpush3.bf16.msra.mxu1 %v1169_v50 }
0x1481   :  { %v1259_v36 = vpop.eup %1258 }
0x1482   :  { %887 = vrot.lane.b32.xlu1 %v1259_v36, %s1335_s2 }
0x1483   :  { %v1261_v38 = vpop.eup %1260 }
0x1484   :  { %v878_v39 = vadd.f32 1.0, %v1261_v38 }
0x1486   :  { %1262 = vrcp.f32 %v878_v39 }
0x1490   :  { %v1263_v40 = vpop.eup %1262 }
0x1491   :  { %v885_v43 = vmul.f32 %v1263_v40, %v883_v5 }
0x14f4   :  { %v888_v41 = vpop.permute.xlu1 %887 }
0x14f5   :  { %v890_v42 = vmul.f32 %v1263_v40, %v888_v41 }
0x14f7   :  { %892 = vrot.lane.b32.xlu0 %v890_v42, %s1336_s21 }
0x1569   :  { %v893_v44 = vpop.permute.xlu0 %892 }
0x156a   :  { %v895_v45 = vadd.f32 %v893_v44, %v885_v43 }
0x156c   :  { %1264 = vtanh.f32 %v895_v45 }
0x1576   :  { %v1265_v15 = vpop.eup %1264 }
0x1577   :  { %898 = vrot.lane.b32.xlu1 %v1265_v15, %s1335_s2 }
0x15e9   :  { %v899_v51 = vpop.permute.xlu1 %898 }
0x15ea   :  { %v901_v53 = vmul.f32 %v1263_v40, %v899_v51 }
0x15ec   :  { %v907_v54 = vrot.slane %v901_v53, 7 }
0x15ee   :  { %908 = vrot.lane.b32.xlu0 %v907_v54, %s1336_s21 }
0x1660   :  { %v909_v17 = vpop.permute.xlu0 %908 }
0x1661   :  { %1157 = vmatmul.mubr.msk.f32.vlgmr.msra.gmra.mrb[0].mxu1 %vm117_vm2, %v909_v17 }
0x1734   :  { %v978_v56 = vpop.f32.mrb[0].mxu1 }
0x1735   :  { %v1171_v57 = vadd.f32 %v978_v56, %v184_v55  ;;  %v1158_v58 = vpop.f32.mrb[1].mxu1 }
0x1737   :  { %982 = vst.msk [vmem:[#allocation8] sm:$0x1] %vm49_vm0, %v1171_v57 }
0x1738   :  { %1311 = shalt.err (!%p1308_p3)
}
0x1739   :  { %s1312_s28 = scalar_lea.hbm %s1561_s4, 16 }
0x173a   :  { %p1313_p4 = scmp.ne.s32.totalorder %s1561_s4, %s1312_s28  ;;  %p1316_p5 = scmp.lt.u32.totalorder %s1312_s28, %s1561_s4 }
0x173c   :  { %p1318_p6 = pnand %p1316_p5, %p1313_p4 }
0x173e   :  { %1321 = shalt.err (!%p1318_p6)
}
0x173f   :  { %992 = dma.vmem_to_hbm [thread:$0]  %s990_s24, 16, %s1561_s4, [#allocation5]  }
0x1740   :  { %1326 = dma.done.wait [#allocation5], 16  }
0x1741   :  { %1327 = vsyncadd [#allocation5], 4294967280 }
0x1742   :  { %996 = vsyncpa [#allocation4], 1 }
0x1743   :  { %997 = vsyncpa [#allocation5], 1 }
0x1744   :  { %998 = vsyncpa [#allocation6], 1 }

</bundles_post_ra>
